<compile_context>
chip_gen: v6e
topology: v6e:2x2x1
jax: 0.10.0
libtpu: 0.0.40
codegen_flags: <defaults>
</compile_context>

<pallas_src>
import jax
import jax.numpy as jnp
from jax.experimental import pallas as pl
from jax.experimental.pallas import tpu as pltpu

BN_EPS = 1e-5


def _residual_block_kernel(x_ref, w1_ref, w2_ref, chan_ref, wse1_ref, wse2_ref,
                           pmat_ref, emat_ref, o_ref):
    x = x_ref[...]                        # (H, bm*L)  f32, batch fused into lanes
    w1 = w1_ref[...]                      # (H, H)  (out, in)
    w2 = w2_ref[...]                      # (H, H)  (out, in)
    wse1 = wse1_ref[...]                  # (R, H)
    wse2 = wse2_ref[...]                  # (H, R)
    pmat = pmat_ref[...]                  # (bm*L, bm)  block-diagonal 1/L (mean pool)
    emat = emat_ref[...]                  # (bm, bm*L)  block-diagonal 1   (gate expand)
    chan = chan_ref[...]                  # (H, 3)
    scale = chan[:, 0:1]                  # gamma * rsqrt(var + eps)
    shift = chan[:, 1:2]                  # (b1 - mean) * scale + beta
    b2 = chan[:, 2:3]                     # second Linear bias

    mm = w1.dtype
    f32 = jnp.float32

    # Linear1 + folded BatchNorm (inference) + Swish, over all bm*L positions at once.
    h = jnp.dot(w1, x.astype(mm), preferred_element_type=f32)           # (H, bm*L)
    h = h * scale + shift
    h = h * jax.nn.sigmoid(h)                                           # Swish
    # Linear2.
    y = jnp.dot(w2, h.astype(mm), preferred_element_type=f32) + b2      # (H, bm*L)

    # SELayer, batched over the bm batch segments living in the lane axis.
    pool = jnp.dot(y.astype(mm), pmat, preferred_element_type=f32)      # (H, bm)
    z = jnp.maximum(
        jnp.dot(wse1, pool.astype(mm), preferred_element_type=f32), 0.0)  # (R, bm)
    g = jax.nn.sigmoid(
        jnp.dot(wse2, z.astype(mm), preferred_element_type=f32))        # (H, bm)
    gate = jnp.dot(g.astype(mm), emat, preferred_element_type=f32)      # (H, bm*L)

    # Residual: x + 0.1 * SE(y).
    o_ref[...] = (x + 0.1 * (y * gate)).astype(o_ref.dtype)


def fold_params(params, *, matmul_dtype=jnp.float32):
    """One-time parameter prep (cache the result; do NOT redo per forward).

    Folds bias1 + BatchNorm (running stats) into a scale/shift pair and packs
    all per-channel vectors into a single (H, 3) operand. Pass
    matmul_dtype=jnp.bfloat16 on v6e/v7x for ~2x MXU / half weight DMA bytes
    (epilogue stays f32); expect ~1e-2 level deviation vs the f32 reference.
    """
    scale = params["bn_gamma"] * jax.lax.rsqrt(params["bn_var"] + BN_EPS)
    shift = (params["b1"] - params["bn_mean"]) * scale + params["bn_beta"]
    chan = jnp.stack([scale, shift, params["b2"]], axis=1).astype(jnp.float32)
    return {
        "w1": params["w1"].astype(matmul_dtype),
        "w2": params["w2"].astype(matmul_dtype),
        "w_se1": params["w_se1"].astype(matmul_dtype),
        "w_se2": params["w_se2"].astype(matmul_dtype),
        "chan": chan,
    }


def residual_block_forward(x, folded, *, bm=None,
                           vmem_cap_bytes=48 * 1024 * 1024):
    """x: (B, H, L) float32 -> (B, H, L) float32."""
    B, H, L = x.shape
    R = folded["w_se1"].shape[0]
    mm_dtype = folded["w1"].dtype
    xbytes = x.dtype.itemsize
    wbytes = jnp.dtype(mm_dtype).itemsize

    def vmem_needed(bm_):
        return (2 * 2 * bm_ * H * L * xbytes            # in + out tiles, double-buffered
                + (2 * H * H + 2 * R * H) * wbytes       # resident weights
                + 2 * bm_ * L * bm_ * wbytes             # pool / expand matrices
                + 3 * H * 4)                             # folded channel params

    # bm selection: a divisor of B; default gives >=2 grid steps (both v7x
    # TensorCores + pipelining), then rounded down (never up) to fit the VMEM cap.
    if bm is None:
        bm = max(1, B // 2)
    bm = max(1, min(bm, B))
    while B % bm:
        bm -= 1
    while bm > 1 and vmem_needed(bm) > vmem_cap_bytes:
        bm -= 1
        while B % bm:
            bm -= 1
    grid = (B // bm,)

    # Lane-fused layout: (B, H, L) -> (H, B*L); batch segments of L lanes each.
    # (Wrapper-side layout plumbing only; the kernel never transposes.)
    x2 = jnp.transpose(x, (1, 0, 2)).reshape(H, B * L)

    # Block-diagonal mean-pool / gate-expand matrices (static -> constants under jit).
    seg = (jnp.arange(bm * L) // L)[:, None] == jnp.arange(bm)[None, :]   # (bm*L, bm)
    pmat = jnp.where(seg, jnp.float32(1.0 / L), jnp.float32(0.0)).astype(mm_dtype)
    emat = jnp.where(seg, jnp.float32(1.0), jnp.float32(0.0)).T.astype(mm_dtype)

    cost = pl.CostEstimate(
        flops=int(4 * H * H * B * L + 4 * H * bm * B * L + 4 * R * H * B
                  + 8 * H * B * L),
        transcendentals=int(B * H * L + B * H),
        bytes_accessed=int(2 * B * H * L * xbytes
                           + (2 * H * H + 2 * R * H) * wbytes + 3 * H * 4),
    )

    out2 = pl.pallas_call(
        _residual_block_kernel,
        out_shape=jax.ShapeDtypeStruct((H, B * L), x.dtype),
        grid=grid,
        in_specs=[
            pl.BlockSpec((H, bm * L), lambda i: (0, i)),   # x slab (lane-tiled batch)
            pl.BlockSpec((H, H), lambda i: (0, 0)),        # W1 (out, in)
            pl.BlockSpec((H, H), lambda i: (0, 0)),        # W2 (out, in)
            pl.BlockSpec((H, 3), lambda i: (0, 0)),        # [scale | shift | b2]
            pl.BlockSpec((R, H), lambda i: (0, 0)),        # SE fc1
            pl.BlockSpec((H, R), lambda i: (0, 0)),        # SE fc2
            pl.BlockSpec((bm * L, bm), lambda i: (0, 0)),  # mean-pool matrix
            pl.BlockSpec((bm, bm * L), lambda i: (0, 0)),  # gate-expand matrix
        ],
        out_specs=pl.BlockSpec((H, bm * L), lambda i: (0, i)),
        compiler_params=pltpu.CompilerParams(
            dimension_semantics=("parallel",),
            vmem_limit_bytes=int(vmem_cap_bytes),
        ),
        cost_estimate=cost,
    )(x2, folded["w1"], folded["w2"], folded["chan"],
      folded["w_se1"], folded["w_se2"], pmat, emat)

    return jnp.transpose(out2.reshape(H, B, L), (1, 0, 2))


def make_params(key, hidden_format, *, se_reduction=4):
    H, _ = hidden_format
    R = max(1, H // se_reduction)
    k = jax.random.split(key, 10)
    s = 1.0 / jnp.sqrt(jnp.float32(H))
    return {
        "w1": jax.random.normal(k[0], (H, H), jnp.float32) * s,
        "b1": jax.random.normal(k[1], (H,), jnp.float32) * 0.01,
        "w2": jax.random.normal(k[2], (H, H), jnp.float32) * s,
        "b2": jax.random.normal(k[3], (H,), jnp.float32) * 0.01,
        "bn_gamma": 1.0 + 0.1 * jax.random.normal(k[4], (H,), jnp.float32),
        "bn_beta": 0.1 * jax.random.normal(k[5], (H,), jnp.float32),
        "bn_mean": 0.1 * jax.random.normal(k[6], (H,), jnp.float32),
        "bn_var": jnp.abs(1.0 + 0.1 * jax.random.normal(k[7], (H,), jnp.float32)),
        "w_se1": jax.random.normal(k[8], (R, H), jnp.float32) * s,
        "w_se2": jax.random.normal(k[9], (H, R), jnp.float32)
                 / jnp.sqrt(jnp.float32(R)),
    }


def reference_forward(x, params):
    """Pure-JAX mirror of the PyTorch ResidualBlock.forward (inference BN)."""
    B, H, L = x.shape
    xt = jnp.transpose(x, (0, 2, 1)).reshape(B * L, H)
    h = xt @ params["w1"].T + params["b1"]
    h = (h - params["bn_mean"]) * jax.lax.rsqrt(params["bn_var"] + BN_EPS)
    h = h * params["bn_gamma"] + params["bn_beta"]
    h = h * jax.nn.sigmoid(h)
    y = h @ params["w2"].T + params["b2"]
    y = jnp.transpose(y.reshape(B, L, H), (0, 2, 1))          # (B, H, L)
    pool = jnp.mean(y, axis=2)                                # (B, H)
    z = jnp.maximum(pool @ params["w_se1"].T, 0.0)            # (B, R)
    g = jax.nn.sigmoid(z @ params["w_se2"].T)                 # (B, H)
    return x + 0.1 * y * g[:, :, None]


if __name__ == "__main__":
    hidden_format = (32, 128)   # (H, L); L a multiple of 128 -> lane-dense tiles
    B = 4

    key = jax.random.PRNGKey(0)
    k_x, k_p = jax.random.split(key)
    x = jax.random.normal(k_x, (B,) + hidden_format, jnp.float32)
    params = make_params(k_p, hidden_format, se_reduction=4)

    folded = fold_params(params)            # one-time prep, cached across calls
    fwd = jax.jit(residual_block_forward)   # bm defaults to B//2 -> grid = (2,)
    out = jax.block_until_ready(fwd(x, folded))

    ref = reference_forward(x, params)
    assert out.shape == (B,) + hidden_format
    assert jnp.allclose(out, ref, atol=1e-4, rtol=1e-4), "mismatch vs reference"

    print("KERNEL_OK")
</pallas_src>

<mosaic_0001>
module attributes {stable_mosaic.version = 11 : i64} {
  func.func @_residual_block_kernel(%arg0: i32, %arg1: memref<32x256xf32, #tpu.memory_space<vmem>>, %arg2: memref<32x32xf32, #tpu.memory_space<vmem>>, %arg3: memref<32x32xf32, #tpu.memory_space<vmem>>, %arg4: memref<32x3xf32, #tpu.memory_space<vmem>>, %arg5: memref<8x32xf32, #tpu.memory_space<vmem>>, %arg6: memref<32x8xf32, #tpu.memory_space<vmem>>, %arg7: memref<256x2xf32, #tpu.memory_space<vmem>>, %arg8: memref<2x256xf32, #tpu.memory_space<vmem>>, %arg9: memref<32x256xf32, #tpu.memory_space<vmem>>) attributes {dimension_semantics = [#tpu.dimension_semantics<parallel>], iteration_bounds = array<i64: 2>, scalar_prefetch = 0 : i64, scratch_operands = 0 : i64, tpu.core_type = #tpu.core_type<tc>, window_params = [{transform_indices = @transform_0, window_bounds = array<i64: 32, 256>}, {pipeline_mode = #tpu.pipeline_mode<synchronous>, transform_indices = @transform_1, window_bounds = array<i64: 32, 32>}, {pipeline_mode = #tpu.pipeline_mode<synchronous>, transform_indices = @transform_2, window_bounds = array<i64: 32, 32>}, {pipeline_mode = #tpu.pipeline_mode<synchronous>, transform_indices = @transform_3, window_bounds = array<i64: 32, 3>}, {pipeline_mode = #tpu.pipeline_mode<synchronous>, transform_indices = @transform_4, window_bounds = array<i64: 8, 32>}, {pipeline_mode = #tpu.pipeline_mode<synchronous>, transform_indices = @transform_5, window_bounds = array<i64: 32, 8>}, {pipeline_mode = #tpu.pipeline_mode<synchronous>, transform_indices = @transform_6, window_bounds = array<i64: 256, 2>}, {pipeline_mode = #tpu.pipeline_mode<synchronous>, transform_indices = @transform_7, window_bounds = array<i64: 2, 256>}, {transform_indices = @transform_8, window_bounds = array<i64: 32, 256>}]} {
    %c0 = arith.constant 0 : index
    %c0_0 = arith.constant 0 : index
    %0 = vector.load %arg1[%c0, %c0_0] : memref<32x256xf32, #tpu.memory_space<vmem>>, vector<32x256xf32>
    %c0_1 = arith.constant 0 : index
    %c0_2 = arith.constant 0 : index
    %1 = vector.load %arg2[%c0_1, %c0_2] : memref<32x32xf32, #tpu.memory_space<vmem>>, vector<32x32xf32>
    %c0_3 = arith.constant 0 : index
    %c0_4 = arith.constant 0 : index
    %2 = vector.load %arg3[%c0_3, %c0_4] : memref<32x32xf32, #tpu.memory_space<vmem>>, vector<32x32xf32>
    %c0_5 = arith.constant 0 : index
    %c0_6 = arith.constant 0 : index
    %3 = vector.load %arg5[%c0_5, %c0_6] : memref<8x32xf32, #tpu.memory_space<vmem>>, vector<8x32xf32>
    %c0_7 = arith.constant 0 : index
    %c0_8 = arith.constant 0 : index
    %4 = vector.load %arg6[%c0_7, %c0_8] : memref<32x8xf32, #tpu.memory_space<vmem>>, vector<32x8xf32>
    %c0_9 = arith.constant 0 : index
    %c0_10 = arith.constant 0 : index
    %5 = vector.load %arg7[%c0_9, %c0_10] : memref<256x2xf32, #tpu.memory_space<vmem>>, vector<256x2xf32>
    %c0_11 = arith.constant 0 : index
    %c0_12 = arith.constant 0 : index
    %6 = vector.load %arg8[%c0_11, %c0_12] : memref<2x256xf32, #tpu.memory_space<vmem>>, vector<2x256xf32>
    %c0_13 = arith.constant 0 : index
    %c0_14 = arith.constant 0 : index
    %7 = vector.load %arg4[%c0_13, %c0_14] : memref<32x3xf32, #tpu.memory_space<vmem>>, vector<32x3xf32>
    %8 = vector.extract_strided_slice %7 {offsets = [0, 0], sizes = [32, 1], strides = [1, 1]} : vector<32x3xf32> to vector<32x1xf32>
    %9 = vector.extract_strided_slice %7 {offsets = [0, 1], sizes = [32, 1], strides = [1, 1]} : vector<32x3xf32> to vector<32x1xf32>
    %10 = vector.extract_strided_slice %7 {offsets = [0, 2], sizes = [32, 1], strides = [1, 1]} : vector<32x3xf32> to vector<32x1xf32>
    %cst = arith.constant dense<0.000000e+00> : vector<32x256xf32>
    %11 = tpu.matmul %1, %0, %cst {dimension_numbers = #tpu.dot_dimension_numbers<[1], [0], [0], [1], [0, 0, 1, 1], [], []>} : vector<32x32xf32>, vector<32x256xf32>, vector<32x256xf32> -> vector<32x256xf32>
    %12 = vector.broadcast %8 : vector<32x1xf32> to vector<32x256xf32>
    %13 = arith.mulf %11, %12 : vector<32x256xf32>
    %14 = vector.broadcast %9 : vector<32x1xf32> to vector<32x256xf32>
    %15 = arith.addf %13, %14 : vector<32x256xf32>
    %16 = arith.negf %15 : vector<32x256xf32>
    %17 = math.exp %16 : vector<32x256xf32>
    %cst_15 = arith.constant 1.000000e+00 : f32
    %18 = vector.broadcast %cst_15 : f32 to vector<32x256xf32>
    %19 = arith.addf %18, %17 : vector<32x256xf32>
    %20 = arith.divf %18, %19 : vector<32x256xf32>
    %21 = arith.mulf %15, %20 : vector<32x256xf32>
    %cst_16 = arith.constant dense<0.000000e+00> : vector<32x256xf32>
    %22 = tpu.matmul %2, %21, %cst_16 {dimension_numbers = #tpu.dot_dimension_numbers<[1], [0], [0], [1], [0, 0, 1, 1], [], []>} : vector<32x32xf32>, vector<32x256xf32>, vector<32x256xf32> -> vector<32x256xf32>
    %23 = vector.broadcast %10 : vector<32x1xf32> to vector<32x256xf32>
    %24 = arith.addf %22, %23 : vector<32x256xf32>
    %cst_17 = arith.constant dense<0.000000e+00> : vector<32x2xf32>
    %25 = tpu.matmul %24, %5, %cst_17 {dimension_numbers = #tpu.dot_dimension_numbers<[1], [0], [0], [1], [0, 0, 1, 1], [], []>} : vector<32x256xf32>, vector<256x2xf32>, vector<32x2xf32> -> vector<32x2xf32>
    %cst_18 = arith.constant dense<0.000000e+00> : vector<8x2xf32>
    %26 = tpu.matmul %3, %25, %cst_18 {dimension_numbers = #tpu.dot_dimension_numbers<[1], [0], [0], [1], [0, 0, 1, 1], [], []>} : vector<8x32xf32>, vector<32x2xf32>, vector<8x2xf32> -> vector<8x2xf32>
    %cst_19 = arith.constant 0.000000e+00 : f32
    %27 = vector.broadcast %cst_19 : f32 to vector<8x2xf32>
    %28 = arith.maximumf %26, %27 : vector<8x2xf32>
    %cst_20 = arith.constant dense<0.000000e+00> : vector<32x2xf32>
    %29 = tpu.matmul %4, %28, %cst_20 {dimension_numbers = #tpu.dot_dimension_numbers<[1], [0], [0], [1], [0, 0, 1, 1], [], []>} : vector<32x8xf32>, vector<8x2xf32>, vector<32x2xf32> -> vector<32x2xf32>
    %30 = arith.negf %29 : vector<32x2xf32>
    %31 = math.exp %30 : vector<32x2xf32>
    %cst_21 = arith.constant 1.000000e+00 : f32
    %32 = vector.broadcast %cst_21 : f32 to vector<32x2xf32>
    %33 = arith.addf %32, %31 : vector<32x2xf32>
    %34 = arith.divf %32, %33 : vector<32x2xf32>
    %cst_22 = arith.constant dense<0.000000e+00> : vector<32x256xf32>
    %35 = tpu.matmul %34, %6, %cst_22 {dimension_numbers = #tpu.dot_dimension_numbers<[1], [0], [0], [1], [0, 0, 1, 1], [], []>} : vector<32x2xf32>, vector<2x256xf32>, vector<32x256xf32> -> vector<32x256xf32>
    %36 = arith.mulf %24, %35 : vector<32x256xf32>
    %cst_23 = arith.constant 1.000000e-01 : f32
    %37 = vector.broadcast %cst_23 : f32 to vector<32x256xf32>
    %38 = arith.mulf %37, %36 : vector<32x256xf32>
    %39 = arith.addf %0, %38 : vector<32x256xf32>
    %c0_24 = arith.constant 0 : index
    %c0_25 = arith.constant 0 : index
    %40 = vector.load %arg9[%c0_24, %c0_25] : memref<32x256xf32, #tpu.memory_space<vmem>>, vector<32x256xf32>
    tpu.vector_store %arg9[%c0_24, %c0_25], %39 {strides = array<i32>} : memref<32x256xf32, #tpu.memory_space<vmem>>, vector<32x256xf32>,
    return
  }
  func.func @transform_0(%arg0: i32) -> (i32, i32) {
    %c0_i32 = arith.constant 0 : i32
    %c0_i32_0 = arith.constant 0 : i32
    return %c0_i32, %arg0 : i32, i32
  }
  func.func @transform_1(%arg0: i32) -> (i32, i32) {
    %c0_i32 = arith.constant 0 : i32
    %c0_i32_0 = arith.constant 0 : i32
    %c0_i32_1 = arith.constant 0 : i32
    return %c0_i32, %c0_i32_0 : i32, i32
  }
  func.func @transform_2(%arg0: i32) -> (i32, i32) {
    %c0_i32 = arith.constant 0 : i32
    %c0_i32_0 = arith.constant 0 : i32
    %c0_i32_1 = arith.constant 0 : i32
    return %c0_i32, %c0_i32_0 : i32, i32
  }
  func.func @transform_3(%arg0: i32) -> (i32, i32) {
    %c0_i32 = arith.constant 0 : i32
    %c0_i32_0 = arith.constant 0 : i32
    %c0_i32_1 = arith.constant 0 : i32
    return %c0_i32, %c0_i32_0 : i32, i32
  }
  func.func @transform_4(%arg0: i32) -> (i32, i32) {
    %c0_i32 = arith.constant 0 : i32
    %c0_i32_0 = arith.constant 0 : i32
    %c0_i32_1 = arith.constant 0 : i32
    return %c0_i32, %c0_i32_0 : i32, i32
  }
  func.func @transform_5(%arg0: i32) -> (i32, i32) {
    %c0_i32 = arith.constant 0 : i32
    %c0_i32_0 = arith.constant 0 : i32
    %c0_i32_1 = arith.constant 0 : i32
    return %c0_i32, %c0_i32_0 : i32, i32
  }
  func.func @transform_6(%arg0: i32) -> (i32, i32) {
    %c0_i32 = arith.constant 0 : i32
    %c0_i32_0 = arith.constant 0 : i32
    %c0_i32_1 = arith.constant 0 : i32
    return %c0_i32, %c0_i32_0 : i32, i32
  }
  func.func @transform_7(%arg0: i32) -> (i32, i32) {
    %c0_i32 = arith.constant 0 : i32
    %c0_i32_0 = arith.constant 0 : i32
    %c0_i32_1 = arith.constant 0 : i32
    return %c0_i32, %c0_i32_0 : i32, i32
  }
  func.func @transform_8(%arg0: i32) -> (i32, i32) {
    %c0_i32 = arith.constant 0 : i32
    %c0_i32_0 = arith.constant 0 : i32
    return %c0_i32, %arg0 : i32, i32
  }
}

</mosaic_0001>

<bundles_post_ra>
// kernel: residual_block_forward.1
= control target key start
LH: loop header
LB: loop body
LE: loop exit
PB: predicated region body
PF: predicated region fallthrough
CT: control target
= control target key end

     0   :  { %s1527_s27 = smov 0   ;;  %s1529_s28 = smov 0   ;;  %s1870_s0 = inlined_call_operand.vmem [shape: f32[32,512], index: 0, kind: input, shape index: {}]   ;;  %s1871_s1 = inlined_call_operand.vmem [shape: f32[32,32], index: 1, kind: input, shape index: {}]   ;;  %s1872_s2 = inlined_call_operand.vmem [shape: f32[32,32], index: 2, kind: input, shape index: {}]   ;;  %s1873_s3 = inlined_call_operand.vmem [shape: f32[32,3], index: 3, kind: input, shape index: {}]   ;;  %s1874_s4 = inlined_call_operand.vmem [shape: f32[8,32], index: 4, kind: input, shape index: {}]   ;;  %s1875_s5 = inlined_call_operand.vmem [shape: f32[32,8], index: 5, kind: input, shape index: {}]   ;;  %s1876_s6 = inlined_call_operand.vmem [shape: f32[256,2], index: 6, kind: input, shape index: {}]   ;;  %s1877_s7 = inlined_call_operand.vmem [shape: f32[2,256], index: 7, kind: input, shape index: {}]   ;;  %s1878_s8 = inlined_call_operand.vmem [shape: f32[32,512], index: 8, kind: output, shape index: {}]  }
   0x1   :  { %s1531_s29 = smov 0  }
   0x2 LB: > { %s1247_s30 = sadd.s32 4294967295, %s1475_s29   ;;  %s1544_s9 = sadd.s32 1, %s1475_s29   ;;  %s1475_s29 = sphi %s1531_s29, %s1882_s29   ;;  %s1471_s28 = sphi %s1529_s28, %s1881_s28   ;;  %s1467_s27 = sphi %s1527_s27, %s1880_s27  }
   0x3   : > { %s22_s10 = ssub.s32 %s1475_s29, %s1544_s9  ;;  %s25_s11 = sadd.s32 1, %s1471_s28 }
   0x4   : > { %p23_p0 = scmp.eq.s32.totalorder %s22_s10, 0  ;;  %p32_p1 = scmp.ne.s32.totalorder %s1471_s28, %s1467_s27 }
   0x5   : > { %p33_p2 = scmp.eq.s32.totalorder %s1475_s29, 0  ;;  %p209_p3 = scmp.eq.s32.totalorder %s1247_s30, 1 }
   0x6   : > { %s1555_s12 = scalar_select %p23_p0, %s1471_s28, %s25_s11  }
   0x7   : > { %p34_p4 = por %p33_p2, %p32_p1  ;;  %p1557_p5 = por %p209_p3, %p32_p1 }
   0x8   : > { %p1250_p6 = scmp.ge.s32.totalorder %s1475_s29, 2 }
   0xa   : > { %252 = sbr.rel (%p1250_p6) target bundleno = 23 (0x17), region = 44 }
   0xf   : > { %255 = sbr.rel (!%p34_p4) target bundleno = 23 (0x17), region = 48  ;;  %s257_s14 = sand.u32 (%p34_p4), 1, %s1471_s28  }
  0x10   : > { %s1294_s15 = sshll.u32 (%p34_p4), %s1475_s29, 4  ;;  %s1251_s16 = sshll.u32 (%p34_p4), %s257_s14, 6 }
  0x11   : > { %s262_s19 = scalar_lea.vmem (%p34_p4), %s1870_s0, %s1294_s15  ;;  %s259_s20 = scalar_lea.vmem (%p34_p4), [#allocation2], %s1251_s16 }
  0x12   : > { %v275_v0 = vld [vmem:[%s262_s19] sm:$0xff] (%p34_p4)  ;;  %v277_v1 = vld [vmem:[%s262_s19 + $0x8] sm:$0xff] (%p34_p4) }
  0x13   : > { %v279_v2 = vld [vmem:[%s262_s19 + $0x20] sm:$0xff] (%p34_p4)  ;;  %276 = vst [vmem:[%s259_s20] sm:$0xff] (%p34_p4), %v275_v0  ;;  %278 = vst [vmem:[%s259_s20 + $0x8] sm:$0xff] (%p34_p4), %v277_v1  ;;  %v281_v3 = vld [vmem:[%s262_s19 + $0x28] sm:$0xff] (%p34_p4) }
  0x14   : > { %280 = vst [vmem:[%s259_s20 + $0x10] sm:$0xff] %v279_v2  ;;  %v283_v4 = vld [vmem:[%s262_s19 + $0x40] sm:$0xff]  ;;  %v285_v5 = vld [vmem:[%s262_s19 + $0x48] sm:$0xff]  ;;  %282 = vst [vmem:[%s259_s20 + $0x18] sm:$0xff] %v281_v3 }
  0x15   : > { %284 = vst [vmem:[%s259_s20 + $0x20] sm:$0xff] %v283_v4  ;;  %286 = vst [vmem:[%s259_s20 + $0x28] sm:$0xff] %v285_v5  ;;  %v287_v6 = vld [vmem:[%s262_s19 + $0x60] sm:$0xff]  ;;  %v289_v7 = vld [vmem:[%s262_s19 + $0x68] sm:$0xff] }
  0x16   : > { %288 = vst [vmem:[%s259_s20 + $0x30] sm:$0xff] %v287_v6  ;;  %290 = vst [vmem:[%s259_s20 + $0x38] sm:$0xff] %v289_v7 }
  0x17 PF: > { %p1254_p7 = scmp.ge.s32.totalorder %s1475_s29, 1  ;;  %p295_p8 = scmp.lt.s32.totalorder %s1475_s29, 3 }
  0x19   : > { %p296_p9 = pnand %p1254_p7, %p295_p8 }
  0x1a   : > { %s302_s21 = sand.u32 (!%p296_p9), 1, %s1467_s27  }
  0x1b   : > { %299 = sbr.rel (%p296_p9) target bundleno = 1357 (0x54d), region = 71  ;;  %s1570_s22 = sshll.u32 (!%p296_p9), %s302_s21, 6 }
  0x1c   : > { %s304_s25 = scalar_lea.vmem (!%p296_p9), [#allocation2], %s1570_s22  ;;  %s1823_s18 = scalar_lea.vmem (!%p296_p9), [#allocation3], %s1570_s22 }
  0x20   : > { %v1477_v8 = vmov 0.0   ;;  %v1576_v9 = vld [vmem:[%s1873_s3 + $0x18] sm:$0xff]  ;;  %v1478_v10 = vmov 0   ;;  %v1479_v11 = vmov 1   ;;  %v1582_v13 = vld [vmem:[%s304_s25 + $0x30] sm:$0xff]  ;;  %v1584_v14 = vld [vmem:[%s304_s25 + $0x28] sm:$0xff] }
  0x21   : > { %471 = vmatprep.mubr.f32.mxu0 %v1477_v8  ;;  %696 = vmatprep.mubr.f32.mxu1 %v1477_v8  ;;  %v1580_v12 = vld [vmem:[%s304_s25 + $0x38] sm:$0xff]  ;;  %v1589_v15 = vld [vmem:[%s304_s25 + $0x20] sm:$0xff]  ;;  %v392_v16 = vld [vmem:[%s1873_s3 + $0x10] sm:$0xff]  ;;  %vm394_vm0 = vcmask 261120   ;;  %v1480_v28 = vmov 2   ;;  %vm1481_vm1 = vmmov 0  }
  0x22   : > { %1398 = vset.pattern.permute.xlu0 %v1478_v10  ;;  %1399 = vset.pattern.permute.xlu1 %v1479_v11  ;;  %v1595_v17 = vld [vmem:[%s304_s25 + $0x18] sm:$0xff]  ;;  %v1598_v18 = vld [vmem:[%s304_s25 + $0x10] sm:$0xff]  ;;  %v391_v19 = vld [vmem:[%s1873_s3 + $0x8] sm:$0xff]  ;;  %vm880_vm2 = vcmask 64512   ;;  %vm1024_vm3 = vcmask 1041408   ;;  %vm1011_vm4 = vcmask 15360  }
  0x23   : > { %513 = vperm.xlu0 %1398, %v1576_v9   ;;  %537 = vperm.xlu1 %1399, %v1576_v9   ;;  %v1604_v20 = vld [vmem:[%s304_s25 + $0x8] sm:$0xff]  ;;  %v1607_v21 = vld [vmem:[%s304_s25] sm:$0xff]  ;;  %v346_v25 = vld [vmem:[%s1871_s1 + $0x10] sm:$0xff]  ;;  %s1295_s22 = sshll.u32 (%p1557_p5), %s1247_s30, 4 }
  0x24   : > { %431 = vmatprep.subr.mxu0 %v1580_v12  ;;  %v344_v22 = vld [vmem:[%s1871_s1] sm:$0xff]  ;;  %v345_v24 = vld [vmem:[%s1871_s1 + $0x8] sm:$0xff]  ;;  %v347_v26 = vld [vmem:[%s1871_s1 + $0x18] sm:$0xff]  ;;  %s1159_s21 = scalar_lea.vmem (%p1557_p5), %s1878_s8, %s1295_s22 }
  0x25   : > { %432 = vmatpush1.msra.mxu0 %v1582_v13  ;;  %v390_v23 = vld [vmem:[%s1873_s3] sm:$0xff]  ;;  %v388_v27 = vld [vmem:[%s1876_s6 + $0xf8] sm:$0xff]  ;;  %v387_v30 = vld [vmem:[%s1876_s6 + $0xf0] sm:$0xff] }
  0x26   : > { %433 = vmatprep.subr.mxu0 %v1584_v14  ;;  %v372_v29 = vld [vmem:[%s1876_s6 + $0x78] sm:$0xff]  ;;  %v371_v31 = vld [vmem:[%s1876_s6 + $0x70] sm:$0xff]  ;;  %v386_v32 = vld [vmem:[%s1876_s6 + $0xe8] sm:$0xff] }
  0x27   : > { %434 = vmatpush1.msra.mxu0 %v1589_v15  ;;  %508 = vperm.xlu0 %1398, %v392_v16   ;;  %v370_v33 = vld [vmem:[%s1876_s6 + $0x68] sm:$0xff]  ;;  %v385_v34 = vld [vmem:[%s1876_s6 + $0xe0] sm:$0xff]  ;;  %v384_v36 = vld [vmem:[%s1876_s6 + $0xd8] sm:$0xff] }
  0x28   : > { %435 = vmatprep.subr.mxu0 %v1595_v17  ;;  %1400 = vset.pattern.permute.xlu1 %v1478_v10  ;;  %v369_v35 = vld [vmem:[%s1876_s6 + $0x60] sm:$0xff]  ;;  %v368_v37 = vld [vmem:[%s1876_s6 + $0x58] sm:$0xff]  ;;  %v383_v38 = vld [vmem:[%s1876_s6 + $0xd0] sm:$0xff] }
  0x29   : > { %436 = vmatpush1.msra.mxu0 %v1598_v18  ;;  %503 = vperm.xlu1 %1400, %v391_v19   ;;  %v367_v39 = vld [vmem:[%s1876_s6 + $0x50] sm:$0xff]  ;;  %v382_v40 = vld [vmem:[%s1876_s6 + $0xc8] sm:$0xff]  ;;  %v381_v42 = vld [vmem:[%s1876_s6 + $0xc0] sm:$0xff] }
  0x2a   : > { %437 = vmatprep.subr.mxu0 %v1604_v20  ;;  %v366_v41 = vld [vmem:[%s1876_s6 + $0x48] sm:$0xff]  ;;  %v365_v43 = vld [vmem:[%s1876_s6 + $0x40] sm:$0xff]  ;;  %v380_v44 = vld [vmem:[%s1876_s6 + $0xb8] sm:$0xff] }
  0x2b   : > { %438 = vmatpush1.msra.mxu0 %v1607_v21  ;;  %1401 = vset.pattern.permute.xlu0 %v1479_v11  ;;  %v364_v45 = vld [vmem:[%s1876_s6 + $0x38] sm:$0xff]  ;;  %v379_v46 = vld [vmem:[%s1876_s6 + $0xb0] sm:$0xff]  ;;  %v378_v48 = vld [vmem:[%s1876_s6 + $0xa8] sm:$0xff] }
  0x2c   : > { %1257 = vmatmul.mubr.msk.f32.vlgmr.msra.gmra.mxu0 %vm394_vm0, %v344_v22  ;;  %533 = vperm.xlu0 %1401, %v392_v16   ;;  %v363_v47 = vld [vmem:[%s1876_s6 + $0x30] sm:$0xff]  ;;  %v362_v49 = vld [vmem:[%s1876_s6 + $0x28] sm:$0xff]  ;;  %v377_v50 = vld [vmem:[%s1876_s6 + $0xa0] sm:$0xff] }
  0x2d   : > { %477 = vmatprep.mubr.f32.mxu0 %v1477_v8  ;;  %498 = vperm.xlu1 %1400, %v390_v23   ;;  %v361_v51 = vld [vmem:[%s1876_s6 + $0x20] sm:$0xff]  ;;  %v376_v52 = vld [vmem:[%s1876_s6 + $0x98] sm:$0xff] }
  0x2e   : > { %1296 = vmatprep.subr.mxu0 %v388_v27  ;;  %v360_v53 = vld [vmem:[%s1876_s6 + $0x18] sm:$0xff] }
  0x2f   : > { %1297 = vmatpush3.msra.mxu0 %v372_v29 }
  0x30   : > { %1258 = vmatmul.mubr.msk.f32.gmra.mxu0 %vm394_vm0, %v345_v24  ;;  %525 = vperm.xlu0 %1401, %v390_v23  }
  0x31   : > { %483 = vmatprep.mubr.f32.mxu0 %v1477_v8  ;;  %1402 = vset.pattern.permute.xlu1 %v1479_v11 }
  0x32   : > { %529 = vperm.xlu1 %1402, %v391_v19   ;;  %1298 = vmatprep.subr.mxu0 %v387_v30 }
  0x33   : > { %1299 = vmatpush3.msra.mxu0 %v371_v31 }
  0x34   : > { %1259 = vmatmul.mubr.msk.f32.gmra.mxu0 %vm394_vm0, %v346_v25  ;;  %1404 = vset.pattern.permute.xlu0 %v1480_v28 }
  0x35   : > { %489 = vmatprep.mubr.f32.mxu0 %v1477_v8  ;;  %609 = vperm.xlu0 %1404, %v391_v19  }
  0x36   : > { %1403 = vset.pattern.permute.xlu1 %v1480_v28  ;;  %1300 = vmatprep.subr.mxu0 %v386_v32 }
  0x37   : > { %605 = vperm.xlu1 %1403, %v390_v23   ;;  %1301 = vmatpush3.msra.mxu0 %v370_v33 }
  0x38   : > { %1260 = vmatmul.mubr.msk.f32.gmra.mxu0 %vm394_vm0, %v347_v26  ;;  %1302 = vmatprep.subr.mxu0 %v385_v34 }
  0x39   : > { %1303 = vmatpush3.msra.mxu0 %v369_v35 }
  0x3a   : > { %1304 = vmatprep.subr.mxu0 %v384_v36 }
  0x3b   : > { %613 = vperm.xlu1 %1403, %v392_v16   ;;  %1305 = vmatpush3.msra.mxu0 %v368_v37 }
  0x3c   : > { %1306 = vmatprep.subr.mxu0 %v383_v38 }
  0x3d   : > { %1307 = vmatpush3.msra.mxu0 %v367_v39 }
  0x3e   : > { %1308 = vmatprep.subr.mxu0 %v382_v40 }
  0x3f   : > { %617 = vperm.xlu1 %1403, %v1576_v9   ;;  %1309 = vmatpush3.msra.mxu0 %v366_v41 }
  0x40   : > { %1310 = vmatprep.subr.mxu0 %v381_v42 }
  0x41   : > { %1311 = vmatpush3.msra.mxu0 %v365_v43 }
  0x42   : > { %1312 = vmatprep.subr.mxu0 %v380_v44 }
  0x43   : > { %1313 = vmatpush3.msra.mxu0 %v364_v45 }
  0x44   : > { %1314 = vmatprep.subr.mxu0 %v379_v46 }
  0x45   : > { %1315 = vmatpush3.msra.mxu0 %v363_v47 }
  0x46   : > { %1316 = vmatprep.subr.mxu0 %v378_v48 }
  0x47   : > { %1317 = vmatpush3.msra.mxu0 %v362_v49 }
  0x48   : > { %1318 = vmatprep.subr.mxu0 %v377_v50 }
  0x49   : > { %1319 = vmatpush3.msra.mxu0 %v361_v51 }
  0x4a   : > { %1320 = vmatprep.subr.mxu0 %v376_v52 }
  0x4b   : > { %1321 = vmatpush3.msra.mxu0 %v360_v53 }
  0x9e   : > { %v514_v54 = vpop.permute.xlu0 %513  ;;  %v538_v55 = vpop.permute.xlu1 %537 }
  0xa2   : > { %v509_v56 = vpop.permute.xlu0 %508 }
  0xa4   : > { %v504_v57 = vpop.permute.xlu1 %503 }
  0xa7   : > { %v534_v58 = vpop.permute.xlu0 %533 }
  0xa8   : > { %v499_v60 = vpop.permute.xlu1 %498 }
  0xab   : > { %v526_v0 = vpop.permute.xlu0 %525 }
  0xad   : > { %v530_v5 = vpop.permute.xlu1 %529 }
  0xec   : > { %v473_v59 = vpop.f32.mrf.mxu0 }
  0xed   : > { %v516_v10 = vmul.f32 %v499_v60, %v473_v59 }
  0xee   : > { %v475_v61 = vpop.f32.mrf.mxu0 }
  0xef   : > { %v517_v62 = vmul.f32 %v499_v60, %v475_v61  ;;  %v1721_v28 = vadd.f32 %v526_v0, %v516_v10  ;;  %v348_v10 = vld [vmem:[%s1872_s2] sm:$0xff] }
  0xf0   : > { %v479_v63 = vpop.f32.mrf.mxu0 }
  0xf1   : > { %v1713_v2 = vadd.f32 %v526_v0, %v517_v62  ;;  %v518_v4 = vmul.f32 %v504_v57, %v479_v63  ;;  %v1261_v37 = vmul.f32 -1.442695, %v1721_v28 }
  0xf2   : > { %v481_v1 = vpop.f32.mrf.mxu0 }
  0xf3   : > { %v519_v3 = vmul.f32 %v504_v57, %v481_v1  ;;  %v1262_v16 = vmul.f32 -1.442695, %v1713_v2  ;;  %v1718_v23 = vadd.f32 %v530_v5, %v518_v4 }
  0xf4   : > { %v485_v6 = vpop.f32.mrf.mxu0 }
  0xf5   : > { %v1715_v7 = vadd.f32 %v530_v5, %v519_v3  ;;  %v520_v9 = vmul.f32 %v509_v56, %v485_v6  ;;  %1405 = vpow2.f32 %v1262_v16  ;;  %v1263_v34 = vmul.f32 -1.442695, %v1718_v23  ;;  %v375_v16 = vld [vmem:[%s1876_s6 + $0x90] sm:$0xff] }
  0xf6   : > { %v487_v11 = vpop.f32.mrf.mxu0  ;;  %1322 = vmatprep.subr.mxu0 %v375_v16 }
  0xf7   : > { %v544_v19 = vadd.f32 %v534_v58, %v520_v9  ;;  %v521_v22 = vmul.f32 %v509_v56, %v487_v11  ;;  %v1264_v24 = vmul.f32 -1.442695, %v1715_v7  ;;  %v351_v11 = vld [vmem:[%s1872_s2 + $0x18] sm:$0xff] }
  0xf8   : > { %v491_v25 = vpop.f32.mrf.mxu0 }
  0xf9   : > { %v545_v26 = vadd.f32 %v534_v58, %v521_v22  ;;  %v522_v27 = vmul.f32 %v514_v54, %v491_v25  ;;  %v1265_v29 = vmul.f32 -1.442695, %v544_v19  ;;  %1407 = vpow2.f32 %v1264_v24  ;;  %v374_v22 = vld [vmem:[%s1876_s6 + $0x88] sm:$0xff]  ;;  %v373_v24 = vld [vmem:[%s1876_s6 + $0x80] sm:$0xff] }
  0xfa   : > { %v493_v30 = vpop.f32.mrf.mxu0  ;;  %v357_v25 = vld [vmem:[%s1876_s6] sm:$0xff] }
  0xfb   : > { %v1266_v31 = vmul.f32 -1.442695, %v545_v26  ;;  %v546_v32 = vadd.f32 %v538_v55, %v522_v27  ;;  %v523_v33 = vmul.f32 %v514_v54, %v493_v30  ;;  %v606_v27 = vpop.permute.xlu1 %605 }
  0xfd   : > { %1409 = vpow2.f32 %v1266_v31  ;;  %v1267_v35 = vmul.f32 -1.442695, %v546_v32  ;;  %v547_v36 = vadd.f32 %v538_v55, %v523_v33 }
  0xfe   : > { %1411 = vpow2.f32 %v1265_v29 }
  0xff   : > { %1413 = vpow2.f32 %v1267_v35  ;;  %v1268_v38 = vmul.f32 -1.442695, %v547_v36  ;;  %v614_v35 = vpop.permute.xlu1 %613 }
 0x100   : > { %1415 = vpow2.f32 %v1263_v34 }
 0x101   : > { %1417 = vpow2.f32 %v1268_v38 }
 0x102   : > { %1419 = vpow2.f32 %v1261_v37  ;;  %v1406_v39 = vpop.eup %1405 }
 0x103   : > { %v573_v53 = vadd.f32 1.0, %v1406_v39 }
 0x106   : > { %v1408_v40 = vpop.eup %1407 }
 0x107   : > { %v575_v50 = vadd.f32 1.0, %v1408_v40 }
 0x10a   : > { %v1410_v41 = vpop.eup %1409 }
 0x10b   : > { %v1412_v42 = vpop.eup %1411  ;;  %v577_v43 = vadd.f32 1.0, %v1410_v41 }
 0x10c   : > { %v1414_v44 = vpop.eup %1413  ;;  %v576_v48 = vadd.f32 1.0, %v1412_v42  ;;  %v618_v42 = vpop.permute.xlu1 %617 }
 0x10d   : > { %v1416_v45 = vpop.eup %1415  ;;  %v578_v46 = vadd.f32 1.0, %v1414_v44  ;;  %1421 = vrcp.f32 %v577_v43 }
 0x10e   : > { %v1418_v47 = vpop.eup %1417  ;;  %v574_v52 = vadd.f32 1.0, %v1416_v45 }
 0x10f   : > { %v1420_v49 = vpop.eup %1419  ;;  %v579_v51 = vadd.f32 1.0, %v1418_v47  ;;  %1423 = vrcp.f32 %v578_v46 }
 0x110   : > { %v572_v54 = vadd.f32 1.0, %v1420_v49 }
 0x111   : > { %1425 = vrcp.f32 %v579_v51 }
 0x112   : > { %1427 = vrcp.f32 %v576_v48 }
 0x113   : > { %1429 = vrcp.f32 %v575_v50 }
 0x114   : > { %1431 = vrcp.f32 %v574_v52 }
 0x115   : > { %1433 = vrcp.f32 %v573_v53 }
 0x116   : > { %1435 = vrcp.f32 %v572_v54 }
 0x11a   : > { %v1422_v55 = vpop.eup %1421 }
 0x11b   : > { %v601_v63 = vmul.f32 %v1422_v55, %v545_v26 }
 0x11c   : > { %v1424_v56 = vpop.eup %1423 }
 0x11d   : > { %v602_v61 = vmul.f32 %v1424_v56, %v546_v32  ;;  %v610_v32 = vpop.permute.xlu0 %609 }
 0x11e   : > { %v1426_v57 = vpop.eup %1425 }
 0x11f   : > { %v1428_v58 = vpop.eup %1427  ;;  %v603_v59 = vmul.f32 %v1426_v57, %v547_v36 }
 0x120   : > { %v1430_v60 = vpop.eup %1429  ;;  %v600_v1 = vmul.f32 %v1428_v58, %v544_v19  ;;  %v359_v19 = vld [vmem:[%s1876_s6 + $0x10] sm:$0xff]  ;;  %v352_v58 = vld [vmem:[%s1874_s4] sm:$0xff] }
 0x121   : > { %v1432_v62 = vpop.eup %1431  ;;  %656 = vmatprep.subr.mxu1 %v603_v59  ;;  %v599_v4 = vmul.f32 %v1430_v60, %v1715_v7  ;;  %v349_v7 = vld [vmem:[%s1872_s2 + $0x8] sm:$0xff]  ;;  %1323 = vmatpush3.msra.mxu0 %v359_v19  ;;  %v353_v59 = vld [vmem:[%s1875_s5] sm:$0xff] }
 0x122   : > { %v1434_v0 = vpop.eup %1433  ;;  %657 = vmatpush1.msra.mxu1 %v602_v61  ;;  %v598_v5 = vmul.f32 %v1432_v62, %v1718_v23  ;;  %1324 = vmatprep.subr.mxu0 %v374_v22  ;;  %v358_v23 = vld [vmem:[%s1876_s6 + $0x8] sm:$0xff] }
 0x123   : > { %v1436_v3 = vpop.eup %1435  ;;  %658 = vmatprep.subr.mxu1 %v601_v63  ;;  %v597_v6 = vmul.f32 %v1434_v0, %v1713_v2  ;;  %v350_v2 = vld [vmem:[%s1872_s2 + $0x10] sm:$0xff]  ;;  %1325 = vmatpush3.msra.mxu0 %v358_v23  ;;  %v354_v62 = vld [vmem:[%s1875_s5 + $0x8] sm:$0xff] }
 0x124   : > { %659 = vmatpush1.msra.mxu1 %v600_v1  ;;  %v596_v9 = vmul.f32 %v1436_v3, %v1721_v28  ;;  %1326 = vmatprep.subr.mxu0 %v373_v24  ;;  %v355_v0 = vld [vmem:[%s1875_s5 + $0x10] sm:$0xff]  ;;  %v356_v1 = vld [vmem:[%s1875_s5 + $0x18] sm:$0xff]  ;;  %v1282_v3 = vld.sshfl [vmem:[%s1877_s7] sm:$0x33 pattern:$0x76325410] }
 0x125   : > { %660 = vmatprep.subr.mxu1 %v599_v4  ;;  %1327 = vmatpush3.msra.mxu0 %v357_v25  ;;  %v1010_v4 = vcombine.high %v1282_v3, %v1282_v3 }
 0x126   : > { %661 = vmatpush1.msra.mxu1 %v598_v5 }
 0x127   : > { %662 = vmatprep.subr.mxu1 %v597_v6 }
 0x128   : > { %663 = vmatpush1.msra.mxu1 %v596_v9 }
 0x129   : > { %1269 = vmatmul.mubr.msk.f32.vlgmr.msra.gmra.mxu1 %vm394_vm0, %v348_v10  ;;  %1350 = vmatprep.subr.mxu1 %v1477_v8 }
 0x12a   : > { %702 = vmatprep.mubr.f32.mxu1 %v1477_v8 }
 0x12d   : > { %1270 = vmatmul.mubr.msk.f32.gmra.mxu1 %vm394_vm0, %v349_v7 }
 0x12e   : > { %708 = vmatprep.mubr.f32.mxu1 %v1477_v8 }
 0x131   : > { %1271 = vmatmul.mubr.msk.f32.gmra.mxu1 %vm394_vm0, %v350_v2 }
 0x132   : > { %714 = vmatprep.mubr.f32.mxu1 %v1477_v8 }
 0x135   : > { %1272 = vmatmul.mubr.msk.f32.gmra.mxu1 %vm394_vm0, %v351_v11 }
 0x136   : > { %1358 = vmatprep.mubr.msk.f32.mxu1 %vm1481_vm1, %v1477_v8 }
 0x1e9   : > { %v698_v26 = vpop.f32.mrf.mxu1 }
 0x1ea   : > { %v1769_v30 = vadd.f32 %v698_v26, %v606_v27 }
 0x1eb   : > { %v700_v28 = vpop.f32.mrf.mxu1 }
 0x1ec   : > { %v1767_v29 = vadd.f32 %v700_v28, %v606_v27 }
 0x1ed   : > { %v704_v31 = vpop.f32.mrf.mxu1 }
 0x1ee   : > { %785 = vmatprep.mubr.f32.mxu0 %v1767_v29  ;;  %v1775_v36 = vadd.f32 %v704_v31, %v610_v32 }
 0x1ef   : > { %v706_v33 = vpop.f32.mrf.mxu1  ;;  %786 = vmatmul.mubr.f32.vlgmr.msra.gmra.mxu0 %v1769_v30 }
 0x1f0   : > { %v1773_v34 = vadd.f32 %v706_v33, %v610_v32 }
 0x1f1   : > { %v710_v37 = vpop.f32.mrf.mxu1 }
 0x1f2   : > { %790 = vmatprep.mubr.f32.mxu0 %v1773_v34  ;;  %v1781_v40 = vadd.f32 %v710_v37, %v614_v35 }
 0x1f3   : > { %v712_v38 = vpop.f32.mrf.mxu1  ;;  %791 = vmatmul.mubr.f32.gmra.mxu0 %v1775_v36 }
 0x1f4   : > { %v1779_v39 = vadd.f32 %v712_v38, %v614_v35 }
 0x1f5   : > { %v716_v41 = vpop.f32.mrf.mxu1 }
 0x1f6   : > { %795 = vmatprep.mubr.f32.mxu0 %v1779_v39  ;;  %v1787_v45 = vadd.f32 %v716_v41, %v618_v42 }
 0x1f7   : > { %v718_v43 = vpop.f32.mrf.mxu1  ;;  %796 = vmatmul.mubr.f32.gmra.mxu0 %v1781_v40 }
 0x1f8   : > { %v1785_v44 = vadd.f32 %v718_v43, %v618_v42 }
 0x1fa   : > { %800 = vmatprep.mubr.f32.mxu0 %v1785_v44 }
 0x1fb   : > { %801 = vmatmul.mubr.f32.gmra.mxu0 %v1787_v45 }
 0x2af   : > { %v1328_v46 = vpop.f32.mrf.mxu0 }
 0x2b1   : > { %v1329_v47 = vpop.f32.mrf.mxu0 }
 0x2b2   : > { %v1330_v57 = vadd.f32 %v1329_v47, %v1328_v46 }
 0x2b3   : > { %v1331_v48 = vpop.f32.mrf.mxu0 }
 0x2b5   : > { %v1332_v49 = vpop.f32.mrf.mxu0 }
 0x2b6   : > { %v1333_v56 = vadd.f32 %v1332_v49, %v1331_v48 }
 0x2b7   : > { %v1334_v50 = vpop.f32.mrf.mxu0 }
 0x2b9   : > { %v1335_v51 = vpop.f32.mrf.mxu0 }
 0x2ba   : > { %v1336_v55 = vadd.f32 %v1335_v51, %v1334_v50 }
 0x2bb   : > { %v1337_v52 = vpop.f32.mrf.mxu0 }
 0x2bd   : > { %v1338_v53 = vpop.f32.mrf.mxu0 }
 0x2be   : > { %v1339_v54 = vadd.f32 %v1338_v53, %v1337_v52 }
 0x2c0   : > { %1351 = vmatpush3.msra.mxu1 %v1339_v54 }
 0x2c1   : > { %1352 = vmatprep.subr.mxu1 %v1477_v8 }
 0x2c2   : > { %1353 = vmatpush3.msra.mxu1 %v1336_v55 }
 0x2c3   : > { %1354 = vmatprep.subr.mxu1 %v1477_v8 }
 0x2c4   : > { %1355 = vmatpush3.msra.mxu1 %v1333_v56 }
 0x2c5   : > { %1356 = vmatprep.subr.mxu1 %v1477_v8 }
 0x2c6   : > { %1357 = vmatpush3.msra.mxu1 %v1330_v57 }
 0x2c7   : > { %1359 = vmatmul.mubr.msk.f32.vlgmr.msra.gmra.mxu1 %vm394_vm0, %v352_v58 }
 0x2c8   : > { %1363 = vmatprep.mubr.msk.f32.mxu1 %vm880_vm2, %v353_v59 }
 0x387   : > { %v875_v60 = vpop.f32.mrf.mxu1 }
 0x388   : > { %v879_v61 = vmax.f32 %v875_v60, 0.0 }
 0x389   : > { %v1360_v63 = vpop.f32.mrf.mxu1 }
 0x38a   : > { %1361 = vmatprep.subr.mxu1 %v879_v61 }
 0x38b   : > { %1362 = vmatpush3.msra.mxu1 %v879_v61 }
 0x38c   : > { %1364 = vmatmul.mubr.msk.f32.vlgmr.msra.gmra.mxu1 %vm880_vm2, %v354_v62  ;;  %1283 = vmatprep.subr.msk.mxu1 %vm1024_vm3, %v1010_v4 }
 0x38d   : > { %1366 = vmatprep.mubr.msk.f32.mxu1 %vm880_vm2, %v355_v0  ;;  %1284 = vmatpush1.msk.msra.mxu1 %vm1024_vm3, %v1282_v3 }
 0x390   : > { %1367 = vmatmul.mubr.msk.f32.gmra.mxu1 %vm880_vm2, %v356_v1 }
 0x391   : > { %1093 = vmatprep.mubr.f32.mxu1 %v1477_v8 }
 0x44c   : > { %v1365_v5 = vpop.f32.mrf.mxu1 }
 0x44d   : > { %v1279_v6 = vmul.f32 -1.442695, %v1365_v5 }
 0x44e   : > { %v959_v9 = vpop.f32.mrf.mxu1 }
 0x44f   : > { %v1278_v10 = vmul.f32 -1.442695, %v959_v9  ;;  %1437 = vpow2.f32 %v1279_v6 }
 0x450   : > { %v1368_v7 = vpop.f32.mrf.mxu1 }
 0x451   : > { %1439 = vpow2.f32 %v1278_v10  ;;  %v1281_v16 = vmul.f32 -1.442695, %v1368_v7 }
 0x452   : > { %v969_v2 = vpop.f32.mrf.mxu1 }
 0x453   : > { %v1280_v11 = vmul.f32 -1.442695, %v969_v2 }
 0x455   : > { %1441 = vpow2.f32 %v1280_v11 }
 0x456   : > { %1443 = vpow2.f32 %v1281_v16 }
 0x45c   : > { %v1438_v19 = vpop.eup %1437 }
 0x45d   : > { %v991_v24 = vadd.f32 1.0, %v1438_v19 }
 0x45e   : > { %v1440_v22 = vpop.eup %1439 }
 0x45f   : > { %v990_v23 = vadd.f32 1.0, %v1440_v22 }
 0x461   : > { %1445 = vrcp.f32 %v990_v23 }
 0x462   : > { %v1442_v25 = vpop.eup %1441  ;;  %1447 = vrcp.f32 %v991_v24 }
 0x463   : > { %v992_v26 = vadd.f32 1.0, %v1442_v25  ;;  %v1444_v27 = vpop.eup %1443 }
 0x464   : > { %v993_v28 = vadd.f32 1.0, %v1444_v27 }
 0x465   : > { %1449 = vrcp.f32 %v992_v26 }
 0x466   : > { %1451 = vrcp.f32 %v993_v28 }
 0x46e   : > { %v1446_v31 = vpop.eup %1445 }
 0x46f   : > { %1285 = vmatmul.mubr.msk.f32.vlgmr.msra.gmra.mxu1 %vm1011_vm4, %v1446_v31  ;;  %v1448_v32 = vpop.eup %1447 }
 0x470   : > { %1099 = vmatprep.mubr.f32.mxu1 %v1477_v8 }
 0x472   : > { %v1450_v33 = vpop.eup %1449 }
 0x473   : > { %1286 = vmatmul.mubr.msk.f32.gmra.mxu1 %vm1011_vm4, %v1448_v32  ;;  %v1452_v35 = vpop.eup %1451 }
 0x474   : > { %1105 = vmatprep.mubr.f32.mxu1 %v1477_v8 }
 0x477   : > { %1287 = vmatmul.mubr.msk.f32.gmra.mxu1 %vm1011_vm4, %v1450_v33 }
 0x478   : > { %1111 = vmatprep.mubr.f32.mxu1 %v1477_v8 }
 0x47b   : > { %1288 = vmatmul.mubr.msk.f32.gmra.mxu1 %vm1011_vm4, %v1452_v35 }
 0x52f   : > { %v1095_v37 = vpop.f32.mrf.mxu1 }
 0x530   : > { %v1118_v38 = vmul.f32 %v1095_v37, %v1769_v30 }
 0x531   : > { %v1097_v41 = vpop.f32.mrf.mxu1 }
 0x532   : > { %v1126_v42 = vmul.f32 0.1, %v1118_v38  ;;  %v1119_v43 = vmul.f32 %v1097_v41, %v1767_v29 }
 0x533   : > { %v1101_v46 = vpop.f32.mrf.mxu1 }
 0x534   : > { %v1134_v47 = vadd.f32 %v1126_v42, %v1607_v21  ;;  %v1127_v48 = vmul.f32 0.1, %v1119_v43  ;;  %v1120_v49 = vmul.f32 %v1101_v46, %v1775_v36 }
 0x535   : > { %v1103_v50 = vpop.f32.mrf.mxu1 }
 0x536   : > { %1142 = vst [vmem:[%s1823_s18] sm:$0xff] %v1134_v47  ;;  %v1135_v8 = vadd.f32 %v1127_v48, %v1604_v20  ;;  %v1128_v30 = vmul.f32 0.1, %v1120_v49  ;;  %v1121_v51 = vmul.f32 %v1103_v50, %v1773_v34 }
 0x537   : > { %v1107_v29 = vpop.f32.mrf.mxu1 }
 0x538   : > { %1143 = vst [vmem:[%s1823_s18 + $0x8] sm:$0xff] %v1135_v8  ;;  %v1136_v21 = vadd.f32 %v1128_v30, %v1598_v18  ;;  %v1129_v52 = vmul.f32 0.1, %v1121_v51  ;;  %v1122_v36 = vmul.f32 %v1107_v29, %v1781_v40 }
 0x539   : > { %v1109_v53 = vpop.f32.mrf.mxu1 }
 0x53a   : > { %1144 = vst [vmem:[%s1823_s18 + $0x10] sm:$0xff] %v1136_v21  ;;  %v1137_v54 = vadd.f32 %v1129_v52, %v1595_v17  ;;  %v1130_v55 = vmul.f32 0.1, %v1122_v36  ;;  %v1123_v20 = vmul.f32 %v1109_v53, %v1779_v39 }
 0x53b   : > { %v1113_v56 = vpop.f32.mrf.mxu1 }
 0x53c   : > { %1145 = vst [vmem:[%s1823_s18 + $0x18] sm:$0xff] %v1137_v54  ;;  %v1138_v34 = vadd.f32 %v1130_v55, %v1589_v15  ;;  %v1131_v57 = vmul.f32 0.1, %v1123_v20  ;;  %v1124_v18 = vmul.f32 %v1113_v56, %v1787_v45 }
 0x53d   : > { %v1115_v58 = vpop.f32.mrf.mxu1 }
 0x53e   : > { %1146 = vst [vmem:[%s1823_s18 + $0x20] sm:$0xff] %v1138_v34  ;;  %v1139_v40 = vadd.f32 %v1131_v57, %v1584_v14  ;;  %v1132_v59 = vmul.f32 0.1, %v1124_v18  ;;  %v1125_v60 = vmul.f32 %v1115_v58, %v1785_v44 }
 0x53f   : > { %v1174_v14 = vld [vmem:[%s1823_s18 + $0x8] sm:$0xff] (%p1557_p5) }
 0x540   : > { %1147 = vst [vmem:[%s1823_s18 + $0x28] sm:$0xff] %v1139_v40  ;;  %v1140_v17 = vadd.f32 %v1132_v59, %v1582_v13  ;;  %v1133_v61 = vmul.f32 0.1, %v1125_v60  ;;  %1156 = sbr.rel (!%p1557_p5) target bundleno = 1357 (0x54d), region = 79  ;;  %v1172_v13 = vld [vmem:[%s1823_s18] sm:$0xff] (%p1557_p5)  ;;  %1175 = vst [vmem:[%s1159_s21 + $0x8] sm:$0xff] (%p1557_p5), %v1174_v14 }
 0x541   : > { %v1176_v15 = vld [vmem:[%s1823_s18 + $0x10] sm:$0xff] (%p1557_p5)  ;;  %1173 = vst [vmem:[%s1159_s21] sm:$0xff] (%p1557_p5), %v1172_v13 }
 0x542   : > { %1148 = vst [vmem:[%s1823_s18 + $0x30] sm:$0xff] %v1140_v17  ;;  %v1141_v39 = vadd.f32 %v1133_v61, %v1580_v12  ;;  %1177 = vst [vmem:[%s1159_s21 + $0x20] sm:$0xff] (%p1557_p5), %v1176_v15 }
 0x543   : > { %v1178_v12 = vld [vmem:[%s1823_s18 + $0x18] sm:$0xff] (%p1557_p5) }
 0x544   : > { %1149 = vst [vmem:[%s1823_s18 + $0x38] sm:$0xff] %v1141_v39  ;;  %1179 = vst [vmem:[%s1159_s21 + $0x28] sm:$0xff] (%p1557_p5), %v1178_v12 }
 0x545   : > { %v1180_v44 = vld [vmem:[%s1823_s18 + $0x20] sm:$0xff] }
 0x546   : > { %1181 = vst [vmem:[%s1159_s21 + $0x40] sm:$0xff] %v1180_v44 }
 0x547   : > { %v1182_v45 = vld [vmem:[%s1823_s18 + $0x28] sm:$0xff] }
 0x548   : > { %1183 = vst [vmem:[%s1159_s21 + $0x48] sm:$0xff] %v1182_v45 }
 0x549   : > { %v1184_v62 = vld [vmem:[%s1823_s18 + $0x30] sm:$0xff] }
 0x54a   : > { %1185 = vst [vmem:[%s1159_s21 + $0x60] sm:$0xff] %v1184_v62 }
 0x54b   : > { %v1186_v63 = vld [vmem:[%s1823_s18 + $0x38] sm:$0xff] }
 0x54c   : > { %1187 = vst [vmem:[%s1159_s21 + $0x68] sm:$0xff] %v1186_v63 }
 0x54d PF: > { %p15_p10 = scmp.ge.s32.totalorder %s1544_s9, 4   ;;  %s1880_s27 = smov %s1471_s28 }
 0x54e   : > { %s1881_s28 = smov %s1555_s12  ;;  %s1882_s29 = smov %s1544_s9 }
 0x54f   :  { %17 = sbr.rel (!%p15_p10) target bundleno = 2 (0x2), region = 133 }

</bundles_post_ra>
